<compile_context>
chip_gen: v5e
topology: v5e:2x2
jax: 0.10.0
libtpu: 0.0.40
codegen_flags: <defaults>
</compile_context>

<pallas_src>
import functools

import jax
import jax.numpy as jnp
from jax.experimental import pallas as pl
from jax.experimental.pallas import tpu as pltpu

INPUT_SIZE = 784
HIDDEN_SIZE = 100
NUM_CLASSES = 10

# Lane-aligned (multiple of 128) padded dims used inside the kernel.
HIDDEN_PAD = 128
OUT_PAD = 128

MAX_TILE_B = 1024  # per-step batch tile cap (VMEM use stays ~8 MiB, well under limits)


def _round_up(n, m):
    return ((n + m - 1) // m) * m


def _cdiv(a, b):
    return (a + b - 1) // b


def _choose_tile_b(batch):
    """Pick a batch tile: big enough to amortize the ~0.35us per-step overhead,
    with >=2 grid steps for large batches so v7x megacore shards the grid."""
    b8 = _round_up(batch, 8)
    if b8 <= 512:
        return b8  # single step; at this size grid overhead is already negligible
    return min(MAX_TILE_B, _round_up(_cdiv(b8, 2), 8))


def mlp_kernel(x_ref, w1_ref, b1_ref, w2_ref, b2_ref, w3_ref, b3_ref, o_ref):
    # Cast x tile to bf16 in-kernel (no extra HBM pass in the wrapper).
    x = x_ref[...].astype(jnp.bfloat16)
    # Layer 1: bf16 MXU matmul, f32 accumulate; bias + ReLU in f32 (v5e has no bf16 VPU).
    h1 = jnp.dot(x, w1_ref[...], preferred_element_type=jnp.float32)
    h1 = jnp.maximum(h1 + b1_ref[...], 0.0).astype(jnp.bfloat16)
    # Layer 2.
    h2 = jnp.dot(h1, w2_ref[...], preferred_element_type=jnp.float32)
    h2 = jnp.maximum(h2 + b2_ref[...], 0.0).astype(jnp.bfloat16)
    # Layer 3 (no activation). Output block is lane-dense (OUT_PAD = 128 wide).
    out = jnp.dot(h2, w3_ref[...], preferred_element_type=jnp.float32)
    o_ref[...] = (out + b3_ref[...]).astype(o_ref.dtype)


def prepare_params(params):
    """One-time pad (100->128, 10->128) and bf16 cast of the weights.

    Done once at init / outside the per-call path so the forward pass emits no
    per-call pad/cast ops. Zero-padded columns + zero-padded biases keep the
    padded lanes exactly zero through ReLU, so they slice away cleanly.
    """
    hp = HIDDEN_PAD - HIDDEN_SIZE
    op = OUT_PAD - NUM_CLASSES
    return dict(
        w1=jnp.pad(params["w1"], ((0, 0), (0, hp))).astype(jnp.bfloat16),
        b1=jnp.pad(params["b1"], ((0, 0), (0, hp))),                      # f32
        w2=jnp.pad(params["w2"], ((0, hp), (0, hp))).astype(jnp.bfloat16),
        b2=jnp.pad(params["b2"], ((0, 0), (0, hp))),                      # f32
        w3=jnp.pad(params["w3"], ((0, hp), (0, op))).astype(jnp.bfloat16),
        b3=jnp.pad(params["b3"], ((0, 0), (0, op))),                      # f32
    )


@functools.partial(jax.jit, static_argnames=())
def neural_net_forward(x, prepared):
    """x: (B, INPUT_SIZE) f32; prepared: output of prepare_params (padded bf16 W, f32 b)."""
    B = x.shape[0]

    tile_b = _choose_tile_b(B)
    b_pad = _round_up(B, tile_b)
    nb = b_pad // tile_b

    # Only pad batch rows when the tile doesn't divide B (zeros -> sliced away).
    if b_pad != B:
        x = jnp.pad(x, ((0, b_pad - B), (0, 0)))

    w1, b1 = prepared["w1"], prepared["b1"]
    w2, b2 = prepared["w2"], prepared["b2"]
    w3, b3 = prepared["w3"], prepared["b3"]

    # Advisory cost estimate so XLA schedules this custom call sensibly.
    flops = 2 * b_pad * (INPUT_SIZE * HIDDEN_PAD
                         + HIDDEN_PAD * HIDDEN_PAD
                         + HIDDEN_PAD * OUT_PAD)
    bytes_accessed = (b_pad * INPUT_SIZE * 4                              # x (f32)
                      + (w1.size + w2.size + w3.size) * 2                 # bf16 weights
                      + (b1.size + b2.size + b3.size) * 4                 # f32 biases
                      + b_pad * OUT_PAD * 4)                              # f32 out
    cost = pl.CostEstimate(flops=flops, transcendentals=0,
                           bytes_accessed=bytes_accessed)

    # Weights/biases: constant block index -> VMEM-resident, DMA'd once.
    def resident(arr):
        return pl.BlockSpec(arr.shape, lambda i: (0, 0))

    out_padded = pl.pallas_call(
        mlp_kernel,
        out_shape=jax.ShapeDtypeStruct((b_pad, OUT_PAD), jnp.float32),
        grid=(nb,),
        in_specs=[
            pl.BlockSpec((tile_b, INPUT_SIZE), lambda i: (i, 0)),   # x batch tile
            resident(w1), resident(b1),
            resident(w2), resident(b2),
            resident(w3), resident(b3),
        ],
        out_specs=pl.BlockSpec((tile_b, OUT_PAD), lambda i: (i, 0)),
        compiler_params=pltpu.CompilerParams(
            dimension_semantics=("parallel",),
            vmem_limit_bytes=32 * 1024 * 1024,
        ),
        cost_estimate=cost,
    )(x, w1, b1, w2, b2, w3, b3)

    # Slice back to the real batch and the 10 real logits.
    return out_padded[:B, :NUM_CLASSES]


def init_params(key):
    """Deterministic init mimicking nn.Linear's U(-1/sqrt(fan_in), 1/sqrt(fan_in))."""
    def linear(key, fan_in, fan_out):
        kw, kb = jax.random.split(key)
        bound = 1.0 / jnp.sqrt(fan_in)
        w = jax.random.uniform(kw, (fan_in, fan_out), jnp.float32, -bound, bound)
        b = jax.random.uniform(kb, (1, fan_out), jnp.float32, -bound, bound)
        return w, b

    k1, k2, k3 = jax.random.split(key, 3)
    w1, b1 = linear(k1, INPUT_SIZE, HIDDEN_SIZE)
    w2, b2 = linear(k2, HIDDEN_SIZE, HIDDEN_SIZE)
    w3, b3 = linear(k3, HIDDEN_SIZE, NUM_CLASSES)
    return dict(w1=w1, b1=b1, w2=w2, b2=b2, w3=w3, b3=b3)


def reference_forward(x, p):
    h1 = jnp.maximum(x @ p["w1"] + p["b1"], 0.0)
    h2 = jnp.maximum(h1 @ p["w2"] + p["b2"], 0.0)
    return h2 @ p["w3"] + p["b3"]


if __name__ == "__main__":
    key = jax.random.PRNGKey(0)
    kx, kp = jax.random.split(key)

    batch = 8
    x = jax.random.normal(kx, (batch, INPUT_SIZE), jnp.float32)
    params = init_params(kp)
    prepared = prepare_params(params)   # one-time pad/cast, outside the call path

    out = neural_net_forward(x, prepared)
    out = jax.block_until_ready(out)

    ref = reference_forward(x, params)
    assert out.shape == (batch, NUM_CLASSES), out.shape
    # bf16 matmul inputs with f32 accumulation -> slightly wider tolerance vs f32 ref.
    assert jnp.allclose(out, ref, atol=5e-2, rtol=5e-2), "mismatch vs reference"

    print("KERNEL_OK")
</pallas_src>

<mosaic_0001>
module attributes {stable_mosaic.version = 11 : i64} {
  func.func @mlp_kernel(%arg0: i32, %arg1: memref<8x784xf32, #tpu.memory_space<vmem>>, %arg2: memref<784x128xbf16, #tpu.memory_space<vmem>>, %arg3: memref<1x128xf32, #tpu.memory_space<vmem>>, %arg4: memref<128x128xbf16, #tpu.memory_space<vmem>>, %arg5: memref<1x128xf32, #tpu.memory_space<vmem>>, %arg6: memref<128x128xbf16, #tpu.memory_space<vmem>>, %arg7: memref<1x128xf32, #tpu.memory_space<vmem>>, %arg8: memref<8x128xf32, #tpu.memory_space<vmem>>) attributes {dimension_semantics = [#tpu.dimension_semantics<parallel>], iteration_bounds = array<i64: 1>, scalar_prefetch = 0 : i64, scratch_operands = 0 : i64, tpu.core_type = #tpu.core_type<tc>, window_params = [{transform_indices = @transform_0, window_bounds = array<i64: 8, 784>}, {pipeline_mode = #tpu.pipeline_mode<synchronous>, transform_indices = @transform_1, window_bounds = array<i64: 784, 128>}, {pipeline_mode = #tpu.pipeline_mode<synchronous>, transform_indices = @transform_2, window_bounds = array<i64: 1, 128>}, {pipeline_mode = #tpu.pipeline_mode<synchronous>, transform_indices = @transform_3, window_bounds = array<i64: 128, 128>}, {pipeline_mode = #tpu.pipeline_mode<synchronous>, transform_indices = @transform_4, window_bounds = array<i64: 1, 128>}, {pipeline_mode = #tpu.pipeline_mode<synchronous>, transform_indices = @transform_5, window_bounds = array<i64: 128, 128>}, {pipeline_mode = #tpu.pipeline_mode<synchronous>, transform_indices = @transform_6, window_bounds = array<i64: 1, 128>}, {transform_indices = @transform_7, window_bounds = array<i64: 8, 128>}]} {
    %c0 = arith.constant 0 : index
    %c0_0 = arith.constant 0 : index
    %0 = vector.load %arg1[%c0, %c0_0] : memref<8x784xf32, #tpu.memory_space<vmem>>, vector<8x784xf32>
    %1 = arith.truncf %0 : vector<8x784xf32> to vector<8x784xbf16>
    %c0_1 = arith.constant 0 : index
    %c0_2 = arith.constant 0 : index
    %2 = vector.load %arg2[%c0_1, %c0_2] : memref<784x128xbf16, #tpu.memory_space<vmem>>, vector<784x128xbf16>
    %cst = arith.constant dense<0.000000e+00> : vector<8x128xf32>
    %3 = tpu.matmul %1, %2, %cst {dimension_numbers = #tpu.dot_dimension_numbers<[1], [0], [0], [1], [0, 0, 1, 1], [], []>} : vector<8x784xbf16>, vector<784x128xbf16>, vector<8x128xf32> -> vector<8x128xf32>
    %c0_3 = arith.constant 0 : index
    %c0_4 = arith.constant 0 : index
    %4 = vector.load %arg3[%c0_3, %c0_4] : memref<1x128xf32, #tpu.memory_space<vmem>>, vector<1x128xf32>
    %5 = vector.broadcast %4 : vector<1x128xf32> to vector<8x128xf32>
    %6 = arith.addf %3, %5 : vector<8x128xf32>
    %cst_5 = arith.constant 0.000000e+00 : f32
    %7 = vector.broadcast %cst_5 : f32 to vector<8x128xf32>
    %8 = arith.maximumf %6, %7 : vector<8x128xf32>
    %9 = arith.truncf %8 : vector<8x128xf32> to vector<8x128xbf16>
    %c0_6 = arith.constant 0 : index
    %c0_7 = arith.constant 0 : index
    %10 = vector.load %arg4[%c0_6, %c0_7] : memref<128x128xbf16, #tpu.memory_space<vmem>>, vector<128x128xbf16>
    %cst_8 = arith.constant dense<0.000000e+00> : vector<8x128xf32>
    %11 = tpu.matmul %9, %10, %cst_8 {dimension_numbers = #tpu.dot_dimension_numbers<[1], [0], [0], [1], [0, 0, 1, 1], [], []>} : vector<8x128xbf16>, vector<128x128xbf16>, vector<8x128xf32> -> vector<8x128xf32>
    %c0_9 = arith.constant 0 : index
    %c0_10 = arith.constant 0 : index
    %12 = vector.load %arg5[%c0_9, %c0_10] : memref<1x128xf32, #tpu.memory_space<vmem>>, vector<1x128xf32>
    %13 = vector.broadcast %12 : vector<1x128xf32> to vector<8x128xf32>
    %14 = arith.addf %11, %13 : vector<8x128xf32>
    %cst_11 = arith.constant 0.000000e+00 : f32
    %15 = vector.broadcast %cst_11 : f32 to vector<8x128xf32>
    %16 = arith.maximumf %14, %15 : vector<8x128xf32>
    %17 = arith.truncf %16 : vector<8x128xf32> to vector<8x128xbf16>
    %c0_12 = arith.constant 0 : index
    %c0_13 = arith.constant 0 : index
    %18 = vector.load %arg6[%c0_12, %c0_13] : memref<128x128xbf16, #tpu.memory_space<vmem>>, vector<128x128xbf16>
    %cst_14 = arith.constant dense<0.000000e+00> : vector<8x128xf32>
    %19 = tpu.matmul %17, %18, %cst_14 {dimension_numbers = #tpu.dot_dimension_numbers<[1], [0], [0], [1], [0, 0, 1, 1], [], []>} : vector<8x128xbf16>, vector<128x128xbf16>, vector<8x128xf32> -> vector<8x128xf32>
    %c0_15 = arith.constant 0 : index
    %c0_16 = arith.constant 0 : index
    %20 = vector.load %arg7[%c0_15, %c0_16] : memref<1x128xf32, #tpu.memory_space<vmem>>, vector<1x128xf32>
    %21 = vector.broadcast %20 : vector<1x128xf32> to vector<8x128xf32>
    %22 = arith.addf %19, %21 : vector<8x128xf32>
    %c0_17 = arith.constant 0 : index
    %c0_18 = arith.constant 0 : index
    %23 = vector.load %arg8[%c0_17, %c0_18] : memref<8x128xf32, #tpu.memory_space<vmem>>, vector<8x128xf32>
    tpu.vector_store %arg8[%c0_17, %c0_18], %22 {strides = array<i32>} : memref<8x128xf32, #tpu.memory_space<vmem>>, vector<8x128xf32>,
    return
  }
  func.func @transform_0(%arg0: i32) -> (i32, i32) {
    %c0_i32 = arith.constant 0 : i32
    %c0_i32_0 = arith.constant 0 : i32
    return %arg0, %c0_i32 : i32, i32
  }
  func.func @transform_1(%arg0: i32) -> (i32, i32) {
    %c0_i32 = arith.constant 0 : i32
    %c0_i32_0 = arith.constant 0 : i32
    %c0_i32_1 = arith.constant 0 : i32
    return %c0_i32, %c0_i32_0 : i32, i32
  }
  func.func @transform_2(%arg0: i32) -> (i32, i32) {
    %c0_i32 = arith.constant 0 : i32
    %c0_i32_0 = arith.constant 0 : i32
    %c0_i32_1 = arith.constant 0 : i32
    return %c0_i32, %c0_i32_0 : i32, i32
  }
  func.func @transform_3(%arg0: i32) -> (i32, i32) {
    %c0_i32 = arith.constant 0 : i32
    %c0_i32_0 = arith.constant 0 : i32
    %c0_i32_1 = arith.constant 0 : i32
    return %c0_i32, %c0_i32_0 : i32, i32
  }
  func.func @transform_4(%arg0: i32) -> (i32, i32) {
    %c0_i32 = arith.constant 0 : i32
    %c0_i32_0 = arith.constant 0 : i32
    %c0_i32_1 = arith.constant 0 : i32
    return %c0_i32, %c0_i32_0 : i32, i32
  }
  func.func @transform_5(%arg0: i32) -> (i32, i32) {
    %c0_i32 = arith.constant 0 : i32
    %c0_i32_0 = arith.constant 0 : i32
    %c0_i32_1 = arith.constant 0 : i32
    return %c0_i32, %c0_i32_0 : i32, i32
  }
  func.func @transform_6(%arg0: i32) -> (i32, i32) {
    %c0_i32 = arith.constant 0 : i32
    %c0_i32_0 = arith.constant 0 : i32
    %c0_i32_1 = arith.constant 0 : i32
    return %c0_i32, %c0_i32_0 : i32, i32
  }
  func.func @transform_7(%arg0: i32) -> (i32, i32) {
    %c0_i32 = arith.constant 0 : i32
    %c0_i32_0 = arith.constant 0 : i32
    return %arg0, %c0_i32 : i32, i32
  }
}

</mosaic_0001>

<bundles_post_ra>
// kernel: neural_net_forward.1
= control target key start
LH: loop header
LB: loop body
LE: loop exit
PB: predicated region body
PF: predicated region fallthrough
CT: control target
= control target key end

     0   :  { %12 = vsyncpa [#allocation3], 0  ;;  %s1354_s0 = inlined_call_operand.hbm [shape: f32[8,784], index: 0, kind: input, shape index: {}]   ;;  %s1355_s1 = inlined_call_operand.hbm [shape: bf16[784,128], index: 1, kind: input, shape index: {}]   ;;  %s1356_s2 = inlined_call_operand.hbm [shape: f32[1,128], index: 2, kind: input, shape index: {}]   ;;  %s1357_s3 = inlined_call_operand.hbm [shape: bf16[128,128], index: 3, kind: input, shape index: {}]   ;;  %s1358_s4 = inlined_call_operand.vmem [shape: f32[1,128], index: 4, kind: input, shape index: {}]   ;;  %s1359_s5 = inlined_call_operand.hbm [shape: bf16[128,128], index: 5, kind: input, shape index: {}]   ;;  %s1360_s6 = inlined_call_operand.vmem [shape: f32[1,128], index: 6, kind: input, shape index: {}]   ;;  %s1361_s7 = inlined_call_operand.hbm [shape: f32[8,128], index: 7, kind: output, shape index: {}]  }
   0x1   :  { %13 = vsyncpa [#allocation6], 0 }
   0x2   :  { %14 = vsyncpa [#allocation9], 0  ;;  %s31_s26 = sshll.u32 %s1355_s1, 4  ;;  %s32_s26 = int_to_ptr.hbm [resolvable:$true] %s31_s26 }
   0x3   :  { %15 = vsyncpa [#allocation4], 0  ;;  %s1282_s27 = smov [#allocation5]   ;;  %s55_s8 = sshll.u32 %s1357_s3, 4  ;;  %s56_s8 = int_to_ptr.hbm [resolvable:$true] %s55_s8 }
   0x4   :  { %s33_s28 = sshll.u32 %s1282_s27, 4  ;;  %s1283_s9 = smov 64   ;;  %s34_s28 = int_to_ptr.vmem [resolvable:$true] %s33_s28 }
   0x5   :  { %s1284_s10 = smov 4   ;;  %s1285_s11 = smov [#allocation8]  }
   0x6   :  { %39 = dma.hbm_to_vmem [thread:$0]  %s32_s26, 6272, %s34_s28, [#allocation6], %s1283_s9, %s1283_s9, %s1284_s10  }
   0x7   :  { %s57_s12 = sshll.u32 %s1285_s11, 4  ;;  %s21_s15 = sshll.u32 %s1354_s0, 4  ;;  %s58_s12 = int_to_ptr.vmem [resolvable:$true] %s57_s12  ;;  %s22_s15 = int_to_ptr.hbm [resolvable:$true] %s21_s15 }
   0x8   :  { %63 = dma.hbm_to_vmem [thread:$0]  %s56_s8, 1024, %s58_s12, [#allocation9], %s1283_s9, %s1283_s9, %s1284_s10  }
   0x9   :  { %s45_s17 = sshll.u32 %s1356_s2, 4  ;;  %s1286_s18 = smov [#allocation2]   ;;  %s46_s17 = int_to_ptr.hbm [resolvable:$true] %s45_s17 }
   0xa   :  { %s23_s19 = sshll.u32 %s1286_s18, 4  ;;  %s1287_s3 = smov [#allocation7]   ;;  %s24_s19 = int_to_ptr.vmem [resolvable:$true] %s23_s19 }
   0xb   :  { %26 = dma.hbm_to_vmem [thread:$0]  %s22_s15, 896, %s24_s19, [#allocation3]  }
   0xc   :  { %s47_s20 = sshll.u32 %s1287_s3, 4  ;;  %s70_s23 = sshll.u32 %s1359_s5, 4  ;;  %s48_s20 = int_to_ptr.vmem [resolvable:$true] %s47_s20  ;;  %s71_s23 = int_to_ptr.hbm [resolvable:$true] %s70_s23 }
   0xd   :  { %50 = dma.hbm_to_vmem [thread:$0]  %s46_s17, 16, %s48_s20, [#allocation6]  }
   0xe   :  { %s1288_s0 = smov [#allocation10]  }
   0xf   :  { %s72_s24 = sshll.u32 %s1288_s0, 4  ;;  %s73_s24 = int_to_ptr.vmem [resolvable:$true] %s72_s24 }
  0x10   :  { %78 = dma.hbm_to_vmem [thread:$0]  %s71_s23, 1024, %s73_s24, [#allocation9], %s1283_s9, %s1283_s9, %s1284_s10  }
  0x11   :  { %1274 = dma.done.wait [#allocation3], 896  }
  0x12   :  { %1275 = vsyncadd [#allocation3], 4294966400 }
  0x13   :  { %1276 = dma.done.wait [#allocation6], 6288  }
  0x14   :  { %1277 = vsyncadd [#allocation6], 4294961008 }
  0x15   :  { %1278 = dma.done.wait [#allocation9], 2048  }
  0x16   :  { %1279 = vsyncadd [#allocation9], 4294965248  ;;  %v1061_v0 = vld [vmem:[#allocation5 + $0x38] sm:$0xff]  ;;  %v1060_v3 = vld [vmem:[#allocation5 + $0x30] sm:$0xff]  ;;  %vm512_vm0 = vcmask 130048   ;;  %s1289_s27 = smov [#allocation11]  }
  0x17   :  { %v1069_v1 = vld [vmem:[#allocation5 + $0x78] sm:$0xff]  ;;  %516 = vmatpush.bf16.msra.mxu0 %v1061_v0  ;;  %v1068_v4 = vld [vmem:[#allocation5 + $0x70] sm:$0xff]  ;;  %v1059_v8 = vld [vmem:[#allocation5 + $0x28] sm:$0xff]  ;;  %s779_s28 = sshll.u32 %s1289_s27, 4  ;;  %s781_s8 = sshll.u32 %s1361_s7, 4  ;;  %s780_s28 = int_to_ptr.vmem [resolvable:$true] %s779_s28  ;;  %s782_s8 = int_to_ptr.hbm [resolvable:$true] %s781_s8 }
  0x18   :  { %v1077_v2 = vld [vmem:[#allocation5 + $0xb8] sm:$0xff]  ;;  %529 = vmatpush.bf16.msra.mxu1 %v1069_v1  ;;  %v1076_v5 = vld [vmem:[#allocation5 + $0xb0] sm:$0xff]  ;;  %v1067_v9 = vld [vmem:[#allocation5 + $0x68] sm:$0xff] }
  0x19   :  { %542 = vmatpush.bf16.msra.mxu2 %v1077_v2  ;;  %v1085_v6 = vld [vmem:[#allocation5 + $0xf8] sm:$0xff]  ;;  %v1084_v7 = vld [vmem:[#allocation5 + $0xf0] sm:$0xff]  ;;  %v1075_v10 = vld [vmem:[#allocation5 + $0xa8] sm:$0xff] }
  0x1a   :  { %555 = vmatpush.bf16.msra.mxu3 %v1085_v6  ;;  %v1083_v11 = vld [vmem:[#allocation5 + $0xe8] sm:$0xff]  ;;  %v1058_v12 = vld [vmem:[#allocation5 + $0x20] sm:$0xff]  ;;  %v1057_v16 = vld [vmem:[#allocation5 + $0x18] sm:$0xff] }
  0x1b   :  { %517 = vmatpush.bf16.msra.mxu0 %v1060_v3  ;;  %v1066_v13 = vld [vmem:[#allocation5 + $0x60] sm:$0xff]  ;;  %v1065_v17 = vld [vmem:[#allocation5 + $0x58] sm:$0xff]  ;;  %v1056_v20 = vld [vmem:[#allocation5 + $0x10] sm:$0xff] }
  0x1c   :  { %530 = vmatpush.bf16.msra.mxu1 %v1068_v4  ;;  %v1074_v14 = vld [vmem:[#allocation5 + $0xa0] sm:$0xff]  ;;  %v1073_v18 = vld [vmem:[#allocation5 + $0x98] sm:$0xff]  ;;  %v1064_v21 = vld [vmem:[#allocation5 + $0x50] sm:$0xff] }
  0x1d   :  { %543 = vmatpush.bf16.msra.mxu2 %v1076_v5  ;;  %v1082_v15 = vld [vmem:[#allocation5 + $0xe0] sm:$0xff]  ;;  %v1081_v19 = vld [vmem:[#allocation5 + $0xd8] sm:$0xff]  ;;  %v1072_v22 = vld [vmem:[#allocation5 + $0x90] sm:$0xff] }
  0x1e   :  { %556 = vmatpush.bf16.msra.mxu3 %v1084_v7  ;;  %v1080_v23 = vld [vmem:[#allocation5 + $0xd0] sm:$0xff]  ;;  %v1055_v24 = vld [vmem:[#allocation5 + $0x8] sm:$0xff]  ;;  %v1054_v27 = vld [vmem:[#allocation5] sm:$0xff] }
  0x1f   :  { %518 = vmatpush.bf16.msra.mxu0 %v1059_v8  ;;  %v1063_v25 = vld [vmem:[#allocation5 + $0x48] sm:$0xff]  ;;  %v1062_v29 = vld [vmem:[#allocation5 + $0x40] sm:$0xff]  ;;  %v103_v31 = vld [vmem:[#allocation2 + $0x8] sm:$0xff] }
  0x20   :  { %531 = vmatpush.bf16.msra.mxu1 %v1067_v9  ;;  %v1071_v26 = vld [vmem:[#allocation5 + $0x88] sm:$0xff]  ;;  %v1093_v32 = vld [vmem:[#allocation5 + $0x138] sm:$0xff]  ;;  %v1070_v34 = vld [vmem:[#allocation5 + $0x80] sm:$0xff]  ;;  %v110_v37 = vpack.c.bf16 %v103_v31, %v103_v31 }
  0x21   :  { %544 = vmatpush.bf16.msra.mxu2 %v1075_v10  ;;  %v1079_v28 = vld [vmem:[#allocation5 + $0xc8] sm:$0xff]  ;;  %v1101_v33 = vld [vmem:[#allocation5 + $0x178] sm:$0xff]  ;;  %v1078_v38 = vld [vmem:[#allocation5 + $0xc0] sm:$0xff] }
  0x22   :  { %557 = vmatpush.bf16.msra.mxu3 %v1083_v11  ;;  %v102_v30 = vld [vmem:[#allocation2] sm:$0xff]  ;;  %v104_v35 = vld [vmem:[#allocation2 + $0x10] sm:$0xff]  ;;  %v1102_v39 = vld [vmem:[#allocation5 + $0x180] sm:$0xff] }
  0x23   :  { %519 = vmatpush.bf16.msra.mxu0 %v1058_v12  ;;  %v109_v36 = vpack.c.bf16 %v102_v30, %v102_v30  ;;  %v105_v40 = vld [vmem:[#allocation2 + $0x18] sm:$0xff]  ;;  %v1092_v41 = vld [vmem:[#allocation5 + $0x130] sm:$0xff]  ;;  %v111_v43 = vpack.c.bf16 %v104_v35, %v104_v35  ;;  %v1091_v45 = vld [vmem:[#allocation5 + $0x128] sm:$0xff] }
  0x24   :  { %532 = vmatpush.bf16.msra.mxu1 %v1066_v13  ;;  %v1100_v42 = vld [vmem:[#allocation5 + $0x170] sm:$0xff]  ;;  %v112_v44 = vpack.c.bf16 %v105_v40, %v105_v40  ;;  %v1099_v46 = vld [vmem:[#allocation5 + $0x168] sm:$0xff]  ;;  %v1090_v47 = vld [vmem:[#allocation5 + $0x120] sm:$0xff] }
  0x25   :  { %545 = vmatpush.bf16.msra.mxu2 %v1074_v14  ;;  %v1098_v48 = vld [vmem:[#allocation5 + $0x160] sm:$0xff]  ;;  %v1089_v49 = vld [vmem:[#allocation5 + $0x118] sm:$0xff]  ;;  %v1088_v52 = vld [vmem:[#allocation5 + $0x110] sm:$0xff] }
  0x26   :  { %558 = vmatpush.bf16.msra.mxu3 %v1082_v15  ;;  %v1097_v50 = vld [vmem:[#allocation5 + $0x158] sm:$0xff]  ;;  %v1096_v53 = vld [vmem:[#allocation5 + $0x150] sm:$0xff]  ;;  %v1087_v55 = vld [vmem:[#allocation5 + $0x108] sm:$0xff] }
  0x27   :  { %520 = vmatpush.bf16.msra.mxu0 %v1057_v16  ;;  %v108_v51 = vld [vmem:[#allocation2 + $0x30] sm:$0xff]  ;;  %v1095_v56 = vld [vmem:[#allocation5 + $0x148] sm:$0xff]  ;;  %v1086_v57 = vld [vmem:[#allocation5 + $0x100] sm:$0xff] }
  0x28   :  { %533 = vmatpush.bf16.msra.mxu1 %v1065_v17  ;;  %v115_v54 = vpack.c.bf16 %v108_v51, %v108_v51  ;;  %v1094_v58 = vld [vmem:[#allocation5 + $0x140] sm:$0xff]  ;;  %v106_v59 = vld [vmem:[#allocation2 + $0x20] sm:$0xff]  ;;  %v107_v60 = vld [vmem:[#allocation2 + $0x28] sm:$0xff] }
  0x29   :  { %546 = vmatpush.bf16.msra.mxu2 %v1073_v18  ;;  %v113_v61 = vpack.c.bf16 %v106_v59, %v106_v59  ;;  %v114_v62 = vpack.c.bf16 %v107_v60, %v107_v60  ;;  %v1110_v63 = vld [vmem:[#allocation8 + $0x38] sm:$0xff]  ;;  %v1109_v0 = vld [vmem:[#allocation8 + $0x30] sm:$0xff]  ;;  %v1108_v1 = vld [vmem:[#allocation8 + $0x28] sm:$0xff] }
  0x2a   :  { %559 = vmatpush.bf16.msra.mxu3 %v1081_v19  ;;  %v1107_v2 = vld [vmem:[#allocation8 + $0x20] sm:$0xff]  ;;  %v1106_v3 = vld [vmem:[#allocation8 + $0x18] sm:$0xff]  ;;  %v1105_v4 = vld [vmem:[#allocation8 + $0x10] sm:$0xff] }
  0x2b   :  { %521 = vmatpush.bf16.msra.mxu0 %v1056_v20  ;;  %v1104_v5 = vld [vmem:[#allocation8 + $0x8] sm:$0xff]  ;;  %v1103_v8 = vld [vmem:[#allocation8] sm:$0xff]  ;;  %v1118_v11 = vld [vmem:[#allocation10 + $0x38] sm:$0xff] }
  0x2c   :  { %534 = vmatpush.bf16.msra.mxu1 %v1064_v21  ;;  %v1117_v14 = vld [vmem:[#allocation10 + $0x30] sm:$0xff]  ;;  %v1127_v15 = vld [vmem:[#allocation7] ss:$0 sm:$0xff]  ;;  %v1116_v16 = vld [vmem:[#allocation10 + $0x28] sm:$0xff] }
  0x2d   :  { %547 = vmatpush.bf16.msra.mxu2 %v1072_v22  ;;  %v1115_v20 = vld [vmem:[#allocation10 + $0x20] sm:$0xff]  ;;  %v1114_v22 = vld [vmem:[#allocation10 + $0x18] sm:$0xff] }
  0x2e   :  { %560 = vmatpush.bf16.msra.mxu3 %v1080_v23 }
  0x2f   :  { %522 = vmatpush.bf16.msra.mxu0 %v1055_v24 }
  0x30   :  { %535 = vmatpush.bf16.msra.mxu1 %v1063_v25  ;;  %v1113_v25 = vld [vmem:[#allocation10 + $0x10] sm:$0xff] }
  0x31   :  { %548 = vmatpush.bf16.msra.mxu2 %v1071_v26 }
  0x32   :  { %561 = vmatpush.bf16.msra.mxu3 %v1079_v28 }
  0x33   :  { %523 = vmatpush.bf16.msra.mxu0 %v1054_v27 }
  0x34   :  { %536 = vmatpush.bf16.msra.mxu1 %v1062_v29 }
  0x35   :  { %549 = vmatpush.bf16.msra.mxu2 %v1070_v34 }
  0x36   :  { %524 = vmatmul.bf16.vlgmr.msra.gmra.mxu0 %v109_v36  ;;  %562 = vmatpush.bf16.msra.mxu3 %v1078_v38  ;;  %v1111_v38 = vld [vmem:[#allocation10] sm:$0xff] }
  0x37   :  { %568 = vmatpush.bf16.msrb.mxu0 %v1093_v32  ;;  %537 = vmatmul.bf16.vlgmr.msra.gmra.mxu1 %v110_v37  ;;  %v1112_v37 = vld [vmem:[#allocation10 + $0x8] sm:$0xff] }
  0x38   :  { %581 = vmatpush.bf16.msrb.mxu1 %v1101_v33  ;;  %550 = vmatmul.bf16.vlgmr.msra.gmra.mxu2 %v111_v43 }
  0x39   :  { %601 = vmatpush.bf16.msrb.mxu2 %v1102_v39  ;;  %563 = vmatmul.bf16.vlgmr.msra.gmra.mxu3 %v112_v44  ;;  %v1128_v39 = vld [vmem:[%s1358_s4] ss:$0 sm:$0xff] }
  0x3a   :  { %677 = vmatpush.bf16.msrb.mxu3 %v1110_v63 }
  0x3b   :  { %569 = vmatpush.bf16.msrb.mxu0 %v1092_v41 }
  0x3c   :  { %582 = vmatpush.bf16.msrb.mxu1 %v1100_v42 }
  0x3d   :  { %760 = vmatpush.bf16.msra.mxu2 %v1118_v11 }
  0x3e   :  { %678 = vmatpush.bf16.msrb.mxu3 %v1109_v0 }
  0x3f   :  { %570 = vmatpush.bf16.msrb.mxu0 %v1091_v45  ;;  %v1129_v45 = vld [vmem:[%s1360_s6] ss:$0 sm:$0xff] }
  0x40   :  { %583 = vmatpush.bf16.msrb.mxu1 %v1099_v46 }
  0x41   :  { %761 = vmatpush.bf16.msra.mxu2 %v1117_v14 }
  0x42   :  { %679 = vmatpush.bf16.msrb.mxu3 %v1108_v1 }
  0x43   :  { %571 = vmatpush.bf16.msrb.mxu0 %v1090_v47 }
  0x44   :  { %584 = vmatpush.bf16.msrb.mxu1 %v1098_v48 }
  0x45   :  { %762 = vmatpush.bf16.msra.mxu2 %v1116_v16 }
  0x46   :  { %680 = vmatpush.bf16.msrb.mxu3 %v1107_v2 }
  0x47   :  { %572 = vmatpush.bf16.msrb.mxu0 %v1089_v49 }
  0x48   :  { %585 = vmatpush.bf16.msrb.mxu1 %v1097_v50  ;;  %989 = vmatmul.msk.bf16.vlgmr.msrb.gmra.mxu2 %vm512_vm0, %v115_v54 }
  0x49   :  { %763 = vmatpush.bf16.msra.mxu2 %v1115_v20 }
  0x4a   :  { %681 = vmatpush.bf16.msrb.mxu3 %v1106_v3 }
  0x4b   :  { %573 = vmatpush.bf16.msrb.mxu0 %v1088_v52 }
  0x4c   :  { %586 = vmatpush.bf16.msrb.mxu1 %v1096_v53 }
  0x4d   :  { %764 = vmatpush.bf16.msra.mxu2 %v1114_v22 }
  0x4e   :  { %682 = vmatpush.bf16.msrb.mxu3 %v1105_v4 }
  0x4f   :  { %574 = vmatpush.bf16.msrb.mxu0 %v1087_v55 }
  0x50   :  { %587 = vmatpush.bf16.msrb.mxu1 %v1095_v56 }
  0x51   :  { %765 = vmatpush.bf16.msra.mxu2 %v1113_v25 }
  0x52   :  { %683 = vmatpush.bf16.msrb.mxu3 %v1104_v5 }
  0x53   :  { %575 = vmatpush.bf16.msrb.mxu0 %v1086_v57 }
  0x54   :  { %588 = vmatpush.bf16.msrb.mxu1 %v1094_v58 }
  0x55   :  { %766 = vmatpush.bf16.msra.mxu2 %v1112_v37 }
  0x56   :  { %576 = vmatmul.bf16.vlgmr.msrb.gmra.mxu0 %v113_v61  ;;  %684 = vmatpush.bf16.msrb.mxu3 %v1103_v8 }
  0x57   :  { %589 = vmatmul.bf16.vlgmr.msrb.gmra.mxu1 %v114_v62 }
  0x59   :  { %767 = vmatpush.bf16.msra.mxu2 %v1111_v38 }
  0xb3   :  { %v525_v6 = vpop.f32.mrf.mxu0 }
  0xb4   :  { %v538_v7 = vpop.f32.mrf.mxu1  ;;  %v526_v17 = vadd.f32 %v1127_v15, %v525_v6 }
  0xb6   :  { %v539_v21 = vadd.f32 %v538_v7, %v526_v17 }
  0xbb   :  { %v527_v9 = vpop.f32.mrf.mxu0  ;;  %v551_v12 = vpop.f32.mrf.mxu2 }
  0xbc   :  { %v540_v10 = vpop.f32.mrf.mxu1  ;;  %v564_v13 = vpop.f32.mrf.mxu3  ;;  %v552_v23 = vadd.f32 %v551_v12, %v539_v21 }
  0xbe   :  { %v565_v26 = vadd.f32 %v564_v13, %v552_v23 }
  0xc3   :  { %v553_v18 = vpop.f32.mrf.mxu2 }
  0xc4   :  { %v566_v19 = vpop.f32.mrf.mxu3 }
  0xcb   :  { %v603_v24 = vpop.f32.mrf.mxu2 }
  0xd3   :  { %v577_v27 = vpop.f32.mrf.mxu0  ;;  %v605_v31 = vpop.f32.mrf.mxu2 }
  0xd4   :  { %v590_v28 = vpop.f32.mrf.mxu1  ;;  %v578_v29 = vadd.f32 %v577_v27, %v565_v26 }
  0xd6   :  { %v591_v30 = vadd.f32 %v590_v28, %v578_v29 }
  0xd8   :  { %v604_v32 = vadd.f32 %v603_v24, %v591_v30 }
  0xda   :  { %v607_v33 = vmax.f32 %v604_v32, 0.0 }
  0xdb   :  { %v579_v34 = vpop.f32.mrf.mxu0 }
  0xdc   :  { %v592_v35 = vpop.f32.mrf.mxu1  ;;  %v608_v36 = vpack.c.bf16 %v607_v33, %v607_v33 }
  0xde   :  { %685 = vmatmul.bf16.vlgmr.msrb.gmra.mxu3 %v608_v36 }
 0x161   :  { %v686_v40 = vpop.f32.mrf.mxu3 }
 0x162   :  { %v687_v41 = vadd.f32 %v1128_v39, %v686_v40 }
 0x164   :  { %v690_v42 = vmax.f32 %v687_v41, 0.0 }
 0x166   :  { %v691_v43 = vpack.c.bf16 %v690_v42, %v690_v42 }
 0x168   :  { %768 = vmatmul.bf16.vlgmr.msra.gmra.mxu2 %v691_v43 }
 0x169   :  { %v688_v44 = vpop.f32.mrf.mxu3 }
 0x1eb   :  { %v769_v46 = vpop.f32.mrf.mxu2 }
 0x1ec   :  { %v770_v47 = vadd.f32 %v1129_v45, %v769_v46 }
 0x1ee   :  { %773 = vst [vmem:[#allocation11] sm:$0xff] %v770_v47 }
 0x1ef   :  { %784 = dma.vmem_to_hbm [thread:$0]  %s780_s28, 128, %s782_s8, [#allocation4]  }
 0x1f3   :  { %v771_v48 = vpop.f32.mrf.mxu2 }
 0x1f4   :  { %1280 = dma.done.wait [#allocation4], 128  }
 0x1f5   :  { %1281 = vsyncadd [#allocation4], 4294967168 }
 0x1f6   :  { %789 = vsyncpa [#allocation3], 1 }
 0x1f7   :  { %790 = vsyncpa [#allocation6], 1 }
 0x1f8   :  { %791 = vsyncpa [#allocation9], 1 }
 0x1f9   :  { %792 = vsyncpa [#allocation4], 1 }

</bundles_post_ra>
